<compile_context>
chip_gen: v5e
topology: v5e:2x2
jax: 0.10.0
libtpu: 0.0.40
codegen_flags: <defaults>
</compile_context>

<pallas_src>
import functools
import math

import jax
import jax.numpy as jnp
from jax import lax
from jax.experimental import pallas as pl
from jax.experimental.pallas import tpu as pltpu

_TARGET_BLOCK_BYTES = 2 * 1024 * 1024  # ~2 MiB x-block per grid step


# ----------------------------------------------------------------------------
# PE table construction (mirrors PyTorch __init__; registered buffer analogue)
# ----------------------------------------------------------------------------
def build_pos_encoding(max_len: int, dim_model: int) -> jnp.ndarray:
    positions = jnp.arange(0, max_len, dtype=jnp.float32)[:, None]         # (L, 1)
    division_term = jnp.exp(
        jnp.arange(0, dim_model, 2, dtype=jnp.float32)
        * (-math.log(10000.0) / dim_model))                                # (D/2,)
    pe = jnp.zeros((max_len, dim_model), dtype=jnp.float32)
    pe = pe.at[:, 0::2].set(jnp.sin(positions * division_term))
    pe = pe.at[:, 1::2].set(jnp.cos(positions * division_term))
    return pe                                                               # (L, D)


# ----------------------------------------------------------------------------
# Kernels
# ----------------------------------------------------------------------------
def _posenc_kernel(x_ref, pe_ref, o_ref):
    # x_ref: (ts, B, D), pe_ref: (ts, D), o_ref: (ts, B, D)
    x = x_ref[...].astype(jnp.float32)
    pe = pe_ref[...].astype(jnp.float32)[:, None, :]        # broadcast over batch
    o_ref[...] = (x + pe).astype(o_ref.dtype)


def _posenc_dropout_kernel(seed_ref, x_ref, pe_ref, o_ref, *,
                           dropout_p, seq_tile, batch, dim):
    # (x + pe) in f32, then inverted dropout with a stateless hash PRNG
    # (portable: lowers on TPU Mosaic and in interpret mode).
    y = x_ref[...].astype(jnp.float32) + pe_ref[...].astype(jnp.float32)[:, None, :]

    shape = y.shape                                          # (ts, B, D), static
    seq_start = pl.program_id(0) * seq_tile
    s_idx = lax.broadcasted_iota(jnp.int32, shape, 0) + seq_start
    b_idx = lax.broadcasted_iota(jnp.int32, shape, 1)
    d_idx = lax.broadcasted_iota(jnp.int32, shape, 2)
    flat = (s_idx * batch + b_idx) * dim + d_idx             # global element id

    u = flat.astype(jnp.uint32)
    seed_mix = seed_ref[0].astype(jnp.uint32) * jnp.uint32(0x9E3779B1)
    u = u ^ seed_mix
    # lowbias32 integer mix (good avalanche, ~8 cheap VPU int ops per element)
    u = u ^ (u >> 16)
    u = u * jnp.uint32(0x7FEB352D)
    u = u ^ (u >> 15)
    u = u * jnp.uint32(0x846CA68B)
    u = u ^ (u >> 16)

    # Keep with probability (1 - p) via unsigned threshold compare.
    thr = jnp.uint32(min(int(round(dropout_p * 4294967296.0)), 0xFFFFFFFF))
    keep = u >= thr
    scale = jnp.float32(1.0 / (1.0 - dropout_p))
    o_ref[...] = jnp.where(keep, y * scale, jnp.float32(0.0)).astype(o_ref.dtype)


# ----------------------------------------------------------------------------
# Wrapper
# ----------------------------------------------------------------------------
def _choose_seq_tile(S: int, row_bytes: int,
                     target_bytes: int = _TARGET_BLOCK_BYTES) -> int:
    # ~2 MiB per x block: amortizes the ~0.35 us/step overhead; double-buffered
    # in + out (~4x block) stays well under every generation's default scoped
    # VMEM (16 MiB v5e, 32 MiB v6e/v7x).
    return max(1, target_bytes // max(1, row_bytes))


def positional_encoding_forward(
    token_embedding: jnp.ndarray,   # (S, B, D)
    pos_encoding: jnp.ndarray,      # (max_len, D) float32 table
    *,
    dropout_p: float = 0.1,
    training: bool = False,
    seed: int = 0,
    seq_tile: int | None = None,
    out_dtype=None,                 # default: PyTorch promotion of x & PE dtypes
    in_place: bool = False,         # alias x's HBM buffer for the output
    core_parallel: bool = False,    # shard seq grid across v7x TensorCores
) -> jnp.ndarray:
    S, B, D = token_embedding.shape
    max_len, D_pe = pos_encoding.shape
    if D_pe != D:
        raise ValueError(f"dim mismatch: x has D={D}, pos_encoding has D={D_pe}")
    if S > max_len:
        raise ValueError(f"seq_len {S} exceeds max_len {max_len}")

    if out_dtype is None:
        out_dtype = jnp.promote_types(token_embedding.dtype, pos_encoding.dtype)
    out_dtype = jnp.dtype(out_dtype)

    # --- pick / normalize the seq tile ------------------------------------
    in_itemsize = jnp.dtype(token_embedding.dtype).itemsize
    row_bytes = B * D * max(in_itemsize, out_dtype.itemsize)
    ts = int(seq_tile) if seq_tile is not None else _choose_seq_tile(S, row_bytes)
    if ts >= S:
        ts = S
    else:
        # multiple of 8 so the 2-D (ts, D) PE block satisfies sublane tiling
        ts = max(8, (ts // 8) * 8)
        if ts >= S:
            ts = S
    if ts == S:
        pe_in = pos_encoding[:S]     # single tile: block == full dims, any S ok
    else:
        pe_in = pos_encoding         # multi tile: ts % 8 == 0, no slice needed

    grid = (pl.cdiv(S, ts),)                                  # uneven last tile ok
    out_shape = jax.ShapeDtypeStruct((S, B, D), out_dtype)

    sem = (pltpu.CORE_PARALLEL,) if core_parallel else ("parallel",)
    compiler_params = pltpu.CompilerParams(
        dimension_semantics=sem,
        vmem_limit_bytes=32 * 1024 * 1024,
    )
    bytes_accessed = (token_embedding.size * in_itemsize
                      + pe_in.size * jnp.dtype(pe_in.dtype).itemsize
                      + S * B * D * out_dtype.itemsize)
    cost = pl.CostEstimate(flops=S * B * D, transcendentals=0,
                           bytes_accessed=bytes_accessed)

    alias_ok = in_place and jnp.dtype(token_embedding.dtype) == out_dtype

    if training and dropout_p > 0.0:
        kernel = functools.partial(_posenc_dropout_kernel,
                                   dropout_p=float(dropout_p),
                                   seq_tile=ts, batch=B, dim=D)
        grid_spec = pltpu.PrefetchScalarGridSpec(
            num_scalar_prefetch=1,
            grid=grid,
            in_specs=[
                pl.BlockSpec((ts, B, D), lambda i, seed_ref: (i, 0, 0)),
                pl.BlockSpec((ts, D), lambda i, seed_ref: (i, 0)),
            ],
            out_specs=pl.BlockSpec((ts, B, D), lambda i, seed_ref: (i, 0, 0)),
        )
        kwargs = {"input_output_aliases": {1: 0}} if alias_ok else {}
        seed_arr = jnp.asarray([seed], dtype=jnp.int32)
        return pl.pallas_call(
            kernel, out_shape=out_shape, grid_spec=grid_spec,
            compiler_params=compiler_params, cost_estimate=cost, **kwargs,
        )(seed_arr, token_embedding, pe_in)

    # Eval mode: nn.Dropout is the identity.
    grid_spec = pltpu.PrefetchScalarGridSpec(
        num_scalar_prefetch=0,
        grid=grid,
        in_specs=[
            pl.BlockSpec((ts, B, D), lambda i: (i, 0, 0)),
            pl.BlockSpec((ts, D), lambda i: (i, 0)),
        ],
        out_specs=pl.BlockSpec((ts, B, D), lambda i: (i, 0, 0)),
    )
    kwargs = {"input_output_aliases": {0: 0}} if alias_ok else {}
    return pl.pallas_call(
        _posenc_kernel, out_shape=out_shape, grid_spec=grid_spec,
        compiler_params=compiler_params, cost_estimate=cost, **kwargs,
    )(token_embedding, pe_in)


# ----------------------------------------------------------------------------
# Demo / self-check
# ----------------------------------------------------------------------------
if __name__ == "__main__":
    dim_model = 32
    dropout_p = 0.1
    max_len = 64

    pe_table = build_pos_encoding(max_len, dim_model)                      # (64, 32)

    # --- case 1: eval forward (dropout == identity), single tile ------------
    seq_len, batch = 8, 2
    x = jax.random.normal(jax.random.PRNGKey(0), (seq_len, batch, dim_model),
                          dtype=jnp.float32)
    out = positional_encoding_forward(x, pe_table, dropout_p=dropout_p,
                                      training=False)
    out = jax.block_until_ready(out)
    ref = x + pe_table[:seq_len][:, None, :]
    assert out.shape == (seq_len, batch, dim_model) and out.dtype == jnp.float32
    assert jnp.allclose(out, ref, atol=1e-6, rtol=1e-6)

    # --- case 2: multi-step grid with an uneven final seq tile --------------
    seq_len2 = 20
    x2 = jax.random.normal(jax.random.PRNGKey(1), (seq_len2, batch, dim_model),
                           dtype=jnp.float32)
    out2 = jax.block_until_ready(
        positional_encoding_forward(x2, pe_table, dropout_p=dropout_p,
                                    training=False, seq_tile=8))
    ref2 = x2 + pe_table[:seq_len2][:, None, :]
    assert jnp.allclose(out2, ref2, atol=1e-6, rtol=1e-6)

    # --- case 3: training path (inverted dropout, portable hash PRNG) -------
    out3 = jax.block_until_ready(
        positional_encoding_forward(x, pe_table, dropout_p=dropout_p,
                                    training=True, seed=123))
    scaled = ref / (1.0 - dropout_p)
    is_dropped = jnp.isclose(out3, 0.0, atol=1e-6)
    is_kept = jnp.isclose(out3, scaled, atol=1e-5, rtol=1e-5)
    assert bool(jnp.all(is_dropped | is_kept))
    keep_frac = float(jnp.mean(jnp.where(is_dropped, 0.0, 1.0)))
    assert 0.75 <= keep_frac <= 0.995, keep_frac

    # --- case 4: bf16 activations with bf16 output (reduced write traffic) ---
    x4 = x.astype(jnp.bfloat16)
    out4 = jax.block_until_ready(
        positional_encoding_forward(x4, pe_table, dropout_p=dropout_p,
                                    training=False, out_dtype=jnp.bfloat16))
    ref4 = (x4.astype(jnp.float32) + pe_table[:seq_len][:, None, :]).astype(jnp.bfloat16)
    assert out4.dtype == jnp.bfloat16
    assert jnp.allclose(out4.astype(jnp.float32), ref4.astype(jnp.float32),
                        atol=2e-2, rtol=2e-2)

    print("KERNEL_OK")
</pallas_src>

<mosaic_0001>
module attributes {stable_mosaic.version = 11 : i64} {
  func.func @_posenc_kernel(%arg0: i32, %arg1: memref<8x2x32xf32, #tpu.memory_space<vmem>>, %arg2: memref<8x32xf32, #tpu.memory_space<vmem>>, %arg3: memref<8x2x32xf32, #tpu.memory_space<vmem>>) attributes {dimension_semantics = [#tpu.dimension_semantics<parallel>], iteration_bounds = array<i64: 1>, scalar_prefetch = 0 : i64, scratch_operands = 0 : i64, tpu.core_type = #tpu.core_type<tc>, window_params = [{transform_indices = @transform_0, window_bounds = array<i64: 8, 2, 32>}, {transform_indices = @transform_1, window_bounds = array<i64: 8, 32>}, {transform_indices = @transform_2, window_bounds = array<i64: 8, 2, 32>}]} {
    %c0 = arith.constant 0 : index
    %c0_0 = arith.constant 0 : index
    %c0_1 = arith.constant 0 : index
    %0 = vector.load %arg1[%c0, %c0_0, %c0_1] : memref<8x2x32xf32, #tpu.memory_space<vmem>>, vector<8x2x32xf32>
    %c0_2 = arith.constant 0 : index
    %c0_3 = arith.constant 0 : index
    %1 = vector.load %arg2[%c0_2, %c0_3] : memref<8x32xf32, #tpu.memory_space<vmem>>, vector<8x32xf32>
    %2 = vector.shape_cast %1 : vector<8x32xf32> to vector<8x1x32xf32>
    %3 = vector.broadcast %2 : vector<8x1x32xf32> to vector<8x2x32xf32>
    %4 = arith.addf %0, %3 : vector<8x2x32xf32>
    %c0_4 = arith.constant 0 : index
    %c0_5 = arith.constant 0 : index
    %c0_6 = arith.constant 0 : index
    %5 = vector.load %arg3[%c0_4, %c0_5, %c0_6] : memref<8x2x32xf32, #tpu.memory_space<vmem>>, vector<8x2x32xf32>
    tpu.vector_store %arg3[%c0_4, %c0_5, %c0_6], %4 {strides = array<i32>} : memref<8x2x32xf32, #tpu.memory_space<vmem>>, vector<8x2x32xf32>,
    return
  }
  func.func @transform_0(%arg0: i32) -> (i32, i32, i32) {
    %c0_i32 = arith.constant 0 : i32
    %c0_i32_0 = arith.constant 0 : i32
    %c0_i32_1 = arith.constant 0 : i32
    return %arg0, %c0_i32, %c0_i32_0 : i32, i32, i32
  }
  func.func @transform_1(%arg0: i32) -> (i32, i32) {
    %c0_i32 = arith.constant 0 : i32
    %c0_i32_0 = arith.constant 0 : i32
    return %arg0, %c0_i32 : i32, i32
  }
  func.func @transform_2(%arg0: i32) -> (i32, i32, i32) {
    %c0_i32 = arith.constant 0 : i32
    %c0_i32_0 = arith.constant 0 : i32
    %c0_i32_1 = arith.constant 0 : i32
    return %arg0, %c0_i32, %c0_i32_0 : i32, i32, i32
  }
}

</mosaic_0001>

<bundles_post_ra>
// kernel: tpu_custom_call.1
= control target key start
LH: loop header
LB: loop body
LE: loop exit
PB: predicated region body
PF: predicated region fallthrough
CT: control target
= control target key end

     0   :  { %7 = vsyncpa [#allocation3], 0  ;;  %s238_s0 = inlined_call_operand.hbm [shape: f32[8,2,32], index: 0, kind: input, shape index: {}]   ;;  %s239_s1 = inlined_call_operand.hbm [shape: f32[8,32], index: 1, kind: input, shape index: {}]   ;;  %s240_s2 = inlined_call_operand.hbm [shape: f32[8,2,32], index: 2, kind: output, shape index: {}]  }
   0x1   :  { %8 = vsyncpa [#allocation6], 0 }
   0x2   :  { %9 = vsyncpa [#allocation4], 0  ;;  %s14_s11 = sshll.u32 %s238_s0, 4  ;;  %s195_s12 = smov [#allocation2]   ;;  %s15_s11 = int_to_ptr.hbm [resolvable:$true] %s14_s11 }
   0x3   :  { %s16_s13 = sshll.u32 %s195_s12, 4  ;;  %s28_s16 = sshll.u32 %s239_s1, 4  ;;  %s17_s13 = int_to_ptr.vmem [resolvable:$true] %s16_s13  ;;  %s29_s16 = int_to_ptr.hbm [resolvable:$true] %s28_s16 }
   0x4   :  { %s196_s17 = smov 32   ;;  %s197_s18 = smov 2  }
   0x5   :  { %22 = dma.hbm_to_vmem [thread:$0]  %s15_s11, 256, %s17_s13, [#allocation3], %s196_s17, %s196_s17, %s197_s18  }
   0x6   :  { %s198_s19 = smov [#allocation5]  }
   0x7   :  { %s30_s20 = sshll.u32 %s198_s19, 4  ;;  %s31_s20 = int_to_ptr.vmem [resolvable:$true] %s30_s20 }
   0x8   :  { %33 = dma.hbm_to_vmem [thread:$0]  %s29_s16, 128, %s31_s20, [#allocation6]  }
   0x9   :  { %189 = dma.done.wait [#allocation3], 256  }
   0xa   :  { %190 = vsyncadd [#allocation3], 4294967040 }
   0xb   :  { %191 = dma.done.wait [#allocation6], 128  }
   0xc   :  { %192 = vsyncadd [#allocation6], 4294967168  ;;  %v42_v0 = vld [vmem:[#allocation2] sm:$0x3]  ;;  %v50_v1 = vld [vmem:[#allocation5] sm:$0xff]  ;;  %vm83_vm0 = vcmask 254976  }
   0xd   :  { %v59_v2 = vperm.slane %v50_v1, 0  ;;  %v43_v3 = vld [vmem:[#allocation2 + $0x2] sm:$0x3]  ;;  %v52_v4 = vrot.slane %v50_v1, 1  ;;  %v53_v5 = vrot.slane %v50_v1, 2  ;;  %v54_v6 = vrot.slane %v50_v1, 3 }
   0xe   :  { %v44_v7 = vld [vmem:[#allocation2 + $0x4] sm:$0x3]  ;;  %v45_v8 = vld [vmem:[#allocation2 + $0x6] sm:$0x3]  ;;  %v55_v9 = vrot.slane %v50_v1, 4  ;;  %v56_v10 = vrot.slane %v50_v1, 5 }
   0xf   :  { %v75_v11 = vadd.f32 %v59_v2, %v42_v0  ;;  %v60_v12 = vperm.slane %v52_v4, 0  ;;  %v61_v13 = vperm.slane %v53_v5, 0  ;;  %v62_v14 = vperm.slane %v54_v6, 0  ;;  %v46_v15 = vld [vmem:[#allocation2 + $0x8] sm:$0x3]  ;;  %s199_s0 = smov [#allocation7]  }
  0x10   :  { %v63_v16 = vperm.slane %v55_v9, 0  ;;  %v47_v17 = vld [vmem:[#allocation2 + $0xa] sm:$0x3]  ;;  %v64_v18 = vperm.slane %v56_v10, 0  ;;  %v57_v19 = vrot.slane %v50_v1, 6  ;;  %v58_v20 = vrot.slane %v50_v1, 7 }
  0x11   :  { %84 = vst.msk [vmem:[#allocation7] sm:$0x3] %vm83_vm0, %v75_v11  ;;  %v76_v21 = vadd.f32 %v60_v12, %v43_v3  ;;  %v77_v22 = vadd.f32 %v61_v13, %v44_v7  ;;  %v78_v23 = vadd.f32 %v62_v14, %v45_v8  ;;  %v48_v24 = vld [vmem:[#allocation2 + $0xc] sm:$0x3]  ;;  %v49_v27 = vld [vmem:[#allocation2 + $0xe] sm:$0x3] }
  0x12   :  { %v79_v25 = vadd.f32 %v63_v16, %v46_v15  ;;  %v65_v26 = vperm.slane %v57_v19, 0  ;;  %v66_v28 = vperm.slane %v58_v20, 0  ;;  %v80_v29 = vadd.f32 %v64_v18, %v47_v17  ;;  %s96_s1 = sshll.u32 %s199_s0, 4  ;;  %s98_s23 = sshll.u32 %s240_s2, 4  ;;  %s97_s1 = int_to_ptr.vmem [resolvable:$true] %s96_s1  ;;  %s99_s23 = int_to_ptr.hbm [resolvable:$true] %s98_s23 }
  0x13   :  { %85 = vst.msk [vmem:[#allocation7 + $0x2] sm:$0x3] %vm83_vm0, %v76_v21 }
  0x14   :  { %86 = vst.msk [vmem:[#allocation7 + $0x4] sm:$0x3] %vm83_vm0, %v77_v22  ;;  %v81_v30 = vadd.f32 %v65_v26, %v48_v24  ;;  %v82_v31 = vadd.f32 %v66_v28, %v49_v27 }
  0x15   :  { %87 = vst.msk [vmem:[#allocation7 + $0x6] sm:$0x3] %vm83_vm0, %v78_v23 }
  0x16   :  { %88 = vst.msk [vmem:[#allocation7 + $0x8] sm:$0x3] %vm83_vm0, %v79_v25 }
  0x17   :  { %89 = vst.msk [vmem:[#allocation7 + $0xa] sm:$0x3] %vm83_vm0, %v80_v29 }
  0x18   :  { %90 = vst.msk [vmem:[#allocation7 + $0xc] sm:$0x3] %vm83_vm0, %v81_v30 }
  0x19   :  { %91 = vst.msk [vmem:[#allocation7 + $0xe] sm:$0x3] %vm83_vm0, %v82_v31 }
  0x1a   :  { %104 = dma.vmem_to_hbm [thread:$0]  %s97_s1, 256, %s99_s23, [#allocation4], %s196_s17, %s196_s17, %s197_s18  }
  0x1b   :  { %193 = dma.done.wait [#allocation4], 256  }
  0x1c   :  { %194 = vsyncadd [#allocation4], 4294967040 }
  0x1d   :  { %109 = vsyncpa [#allocation3], 1 }
  0x1e   :  { %110 = vsyncpa [#allocation6], 1 }
  0x1f   :  { %111 = vsyncpa [#allocation4], 1 }

</bundles_post_ra>
